<compile_context>
chip_gen: v6e
topology: v6e:2x2x1
jax: 0.10.0
libtpu: 0.0.40
codegen_flags: <defaults>
</compile_context>

<pallas_src>
import functools

import jax
import jax.numpy as jnp
from jax.experimental import pallas as pl
from jax.experimental.pallas import tpu as pltpu


def _round_up(x, m):
    return ((x + m - 1) // m) * m


def _edge_gcn_kernel(adj_ref, sup_ref, out_ref, acc_ref, *, inv_t):
    t = pl.program_id(1)          # edge-type index
    k = pl.program_id(2)          # K (adj-column) tile index
    nk = pl.num_programs(2)

    # Zero the resident output block on the very first visit of this row tile.
    @pl.when(jnp.logical_and(t == 0, k == 0))
    def _():
        out_ref[...] = jnp.zeros_like(out_ref)

    # Zero the per-type accumulator at the start of each K reduction.
    @pl.when(k == 0)
    def _():
        acc_ref[...] = jnp.zeros_like(acc_ref)

    # MXU: [TM, TK] @ [TK, Dp], accumulated in f32.
    acc_ref[...] += jnp.dot(adj_ref[0], sup_ref[0],
                            preferred_element_type=jnp.float32)

    # End of K reduction for this edge type: relu and add 1/T of it to the mean.
    @pl.when(k == nk - 1)
    def _():
        out_ref[...] += jnp.maximum(acc_ref[...], 0.0) * inv_t


def edge_level_gcn(adj, x, w, b, *, tm=1024, tk=2048,
                   compute_dtype=jnp.bfloat16):
    """adj: [T, N, N], x: [T, N, D], w: [T, D, D], b: [T, 1, D] -> [N, D]."""
    T, N, D = x.shape

    # Hoisted per-type linear (tiny vs. adj streaming): S_t = X_t @ W_t + b_t.
    support = jnp.einsum("tnd,tde->tne", x, w) + b            # [T, N, D] f32

    # Lane-dense / tile-aligned padding.
    dp = _round_up(D, 128)                            # lane-dense feature width
    tm = _round_up(min(tm, _round_up(N, 8)), 8)       # row tile   (sublane dim)
    tk = _round_up(min(tk, _round_up(N, 128)), 128)   # K tile     (lane dim)
    nm = _round_up(N, tm)                             # padded rows
    nkd = _round_up(N, tk)                            # padded K extent

    adj_p = jnp.pad(adj.astype(compute_dtype),
                    ((0, 0), (0, nm - N), (0, nkd - N)))
    sup_p = jnp.pad(support.astype(compute_dtype),
                    ((0, 0), (0, nkd - N), (0, dp - D)))

    grid = (nm // tm, T, nkd // tk)                   # (rows, types, K-inner)

    adj_bytes = adj_p.size * adj_p.dtype.itemsize
    sup_bytes = sup_p.size * sup_p.dtype.itemsize * (nm // tm)
    out_bytes = nm * dp * 4
    cost = pl.CostEstimate(flops=2 * T * nm * nkd * dp,
                           transcendentals=0,
                           bytes_accessed=adj_bytes + sup_bytes + out_bytes)

    grid_spec = pltpu.PrefetchScalarGridSpec(
        num_scalar_prefetch=0,
        grid=grid,
        in_specs=[
            pl.BlockSpec((1, tm, tk), lambda i, t, k: (t, i, k)),   # adj tiles
            pl.BlockSpec((1, tk, dp), lambda i, t, k: (t, k, 0)),   # support
        ],
        out_specs=pl.BlockSpec((tm, dp), lambda i, t, k: (i, 0)),
        scratch_shapes=[pltpu.VMEM((tm, dp), jnp.float32)],
    )

    out_padded = pl.pallas_call(
        functools.partial(_edge_gcn_kernel, inv_t=float(1.0 / T)),
        out_shape=jax.ShapeDtypeStruct((nm, dp), jnp.float32),
        grid_spec=grid_spec,
        compiler_params=pltpu.CompilerParams(
            dimension_semantics=("parallel", "arbitrary", "arbitrary"),
            vmem_limit_bytes=48 * 1024 * 1024),
        cost_estimate=cost,
    )(adj_p, sup_p)

    return out_padded[:N, :D].astype(x.dtype)


def edge_level_gcn_ref(adj, x, w, b):
    """Pure-JAX reference of EdgeLevelGCN.forward for verification."""
    outs = []
    for t in range(x.shape[0]):
        support = x[t] @ w[t] + b[t]
        outs.append(jnp.maximum(adj[t] @ support, 0.0))
    return jnp.mean(jnp.stack(outs, axis=0), axis=0)


if __name__ == "__main__":
    # Small, module-consistent shapes: att_dim=32, type_num=3, num_nodes=16.
    att_dim, type_num, num_nodes = 32, 3, 16

    key = jax.random.PRNGKey(0)
    k_feat, k_adj, k_w, k_b = jax.random.split(key, 4)

    # features: [N, T, D] like the PyTorch module's `features[:, i, :]`.
    features = jax.random.normal(k_feat, (num_nodes, type_num, att_dim),
                                 dtype=jnp.float32)
    adj = jax.random.uniform(k_adj, (type_num, num_nodes, num_nodes),
                             dtype=jnp.float32)
    adj = adj / jnp.sum(adj, axis=-1, keepdims=True)

    # Deterministic synthetic GCNLayer parameters (one Linear per edge type).
    w = 0.1 * jax.random.normal(k_w, (type_num, att_dim, att_dim),
                                dtype=jnp.float32)
    b = 0.1 * jax.random.normal(k_b, (type_num, 1, att_dim), dtype=jnp.float32)

    # Re-layout features [N, T, D] -> [T, N, D] (plain-JAX glue).
    x = jnp.transpose(features, (1, 0, 2))

    ref = edge_level_gcn_ref(adj, x, w, b)

    # f32 compute path: tight check of the tiled kernel structure.
    out_f32 = jax.block_until_ready(
        edge_level_gcn(adj, x, w, b, compute_dtype=jnp.float32))
    assert out_f32.shape == (num_nodes, att_dim)
    assert jnp.allclose(out_f32, ref, atol=1e-4, rtol=1e-4)

    # bf16 compute path (default, bandwidth-optimized): loose check.
    out = jax.block_until_ready(edge_level_gcn(adj, x, w, b))
    assert out.shape == (num_nodes, att_dim)
    assert jnp.allclose(out, ref, atol=3e-2, rtol=3e-2)

    print("KERNEL_OK")
</pallas_src>

<mosaic_0001>
module attributes {stable_mosaic.version = 11 : i64} {
  func.func @_edge_gcn_kernel(%arg0: i32, %arg1: i32, %arg2: i32, %arg3: memref<1x16x128xf32, #tpu.memory_space<vmem>>, %arg4: memref<1x128x128xf32, #tpu.memory_space<vmem>>, %arg5: memref<16x128xf32, #tpu.memory_space<vmem>>, %arg6: memref<16x128xf32, #tpu.memory_space<vmem>>) attributes {dimension_semantics = [#tpu.dimension_semantics<parallel>, #tpu.dimension_semantics<arbitrary>, #tpu.dimension_semantics<arbitrary>], iteration_bounds = array<i64: 1, 3, 1>, scalar_prefetch = 0 : i64, scratch_operands = 1 : i64, tpu.core_type = #tpu.core_type<tc>, window_params = [{transform_indices = @transform_0, window_bounds = array<i64: 1, 16, 128>}, {transform_indices = @transform_1, window_bounds = array<i64: 1, 128, 128>}, {transform_indices = @transform_2, window_bounds = array<i64: 16, 128>}]} {
    %c0_i32 = arith.constant 0 : i32
    %0 = arith.cmpi eq, %arg1, %c0_i32 : i32
    %c0_i32_0 = arith.constant 0 : i32
    %1 = arith.cmpi eq, %arg2, %c0_i32_0 : i32
    %2 = arith.andi %0, %1 : i1
    %3 = arith.extui %2 : i1 to i32
    %c0_i32_1 = arith.constant 0 : i32
    %4 = arith.cmpi ne, %3, %c0_i32_1 : i32
    scf.if %4 {
      %cst_15 = arith.constant 0.000000e+00 : f32
      %19 = vector.broadcast %cst_15 : f32 to vector<16x128xf32>
      %c0_16 = arith.constant 0 : index
      %c0_17 = arith.constant 0 : index
      %20 = vector.load %arg5[%c0_16, %c0_17] : memref<16x128xf32, #tpu.memory_space<vmem>>, vector<16x128xf32>
      tpu.vector_store %arg5[%c0_16, %c0_17], %19 {strides = array<i32>} : memref<16x128xf32, #tpu.memory_space<vmem>>, vector<16x128xf32>,
    } else {
    }
    %c0_i32_2 = arith.constant 0 : i32
    %5 = arith.cmpi eq, %arg2, %c0_i32_2 : i32
    %6 = arith.extui %5 : i1 to i32
    %c0_i32_3 = arith.constant 0 : i32
    %7 = arith.cmpi ne, %6, %c0_i32_3 : i32
    scf.if %7 {
      %cst_15 = arith.constant 0.000000e+00 : f32
      %19 = vector.broadcast %cst_15 : f32 to vector<16x128xf32>
      %c0_16 = arith.constant 0 : index
      %c0_17 = arith.constant 0 : index
      %20 = vector.load %arg6[%c0_16, %c0_17] : memref<16x128xf32, #tpu.memory_space<vmem>>, vector<16x128xf32>
      tpu.vector_store %arg6[%c0_16, %c0_17], %19 {strides = array<i32>} : memref<16x128xf32, #tpu.memory_space<vmem>>, vector<16x128xf32>,
    } else {
    }
    %c0 = arith.constant 0 : index
    %c0_4 = arith.constant 0 : index
    %8 = vector.load %arg6[%c0, %c0_4] : memref<16x128xf32, #tpu.memory_space<vmem>>, vector<16x128xf32>
    %c0_5 = arith.constant 0 : index
    %c0_6 = arith.constant 0 : index
    %c0_7 = arith.constant 0 : index
    %9 = vector.load %arg3[%c0_5, %c0_6, %c0_7] : memref<1x16x128xf32, #tpu.memory_space<vmem>>, vector<1x16x128xf32>
    %10 = vector.shape_cast %9 : vector<1x16x128xf32> to vector<16x128xf32>
    %c0_8 = arith.constant 0 : index
    %c0_9 = arith.constant 0 : index
    %c0_10 = arith.constant 0 : index
    %11 = vector.load %arg4[%c0_8, %c0_9, %c0_10] : memref<1x128x128xf32, #tpu.memory_space<vmem>>, vector<1x128x128xf32>
    %12 = vector.shape_cast %11 : vector<1x128x128xf32> to vector<128x128xf32>
    %cst = arith.constant dense<0.000000e+00> : vector<16x128xf32>
    %13 = tpu.matmul %10, %12, %cst {dimension_numbers = #tpu.dot_dimension_numbers<[1], [0], [0], [1], [0, 0, 1, 1], [], []>} : vector<16x128xf32>, vector<128x128xf32>, vector<16x128xf32> -> vector<16x128xf32>
    %14 = arith.addf %8, %13 : vector<16x128xf32>
    %c0_11 = arith.constant 0 : index
    %c0_12 = arith.constant 0 : index
    %15 = vector.load %arg6[%c0_11, %c0_12] : memref<16x128xf32, #tpu.memory_space<vmem>>, vector<16x128xf32>
    tpu.vector_store %arg6[%c0_11, %c0_12], %14 {strides = array<i32>} : memref<16x128xf32, #tpu.memory_space<vmem>>, vector<16x128xf32>,
    %c0_i32_13 = arith.constant 0 : i32
    %16 = arith.cmpi eq, %arg2, %c0_i32_13 : i32
    %17 = arith.extui %16 : i1 to i32
    %c0_i32_14 = arith.constant 0 : i32
    %18 = arith.cmpi ne, %17, %c0_i32_14 : i32
    scf.if %18 {
      %c0_15 = arith.constant 0 : index
      %c0_16 = arith.constant 0 : index
      %19 = vector.load %arg5[%c0_15, %c0_16] : memref<16x128xf32, #tpu.memory_space<vmem>>, vector<16x128xf32>
      %c0_17 = arith.constant 0 : index
      %c0_18 = arith.constant 0 : index
      %20 = vector.load %arg6[%c0_17, %c0_18] : memref<16x128xf32, #tpu.memory_space<vmem>>, vector<16x128xf32>
      %cst_19 = arith.constant 0.000000e+00 : f32
      %21 = vector.broadcast %cst_19 : f32 to vector<16x128xf32>
      %22 = arith.maximumf %20, %21 : vector<16x128xf32>
      %cst_20 = arith.constant 0.333333343 : f32
      %23 = vector.broadcast %cst_20 : f32 to vector<16x128xf32>
      %24 = arith.mulf %22, %23 : vector<16x128xf32>
      %25 = arith.addf %19, %24 : vector<16x128xf32>
      %c0_21 = arith.constant 0 : index
      %c0_22 = arith.constant 0 : index
      %26 = vector.load %arg5[%c0_21, %c0_22] : memref<16x128xf32, #tpu.memory_space<vmem>>, vector<16x128xf32>
      tpu.vector_store %arg5[%c0_21, %c0_22], %25 {strides = array<i32>} : memref<16x128xf32, #tpu.memory_space<vmem>>, vector<16x128xf32>,
    } else {
    }
    return
  }
  func.func @transform_0(%arg0: i32, %arg1: i32, %arg2: i32) -> (i32, i32, i32) {
    %c0_i32 = arith.constant 0 : i32
    return %arg1, %arg0, %arg2 : i32, i32, i32
  }
  func.func @transform_1(%arg0: i32, %arg1: i32, %arg2: i32) -> (i32, i32, i32) {
    %c0_i32 = arith.constant 0 : i32
    %c0_i32_0 = arith.constant 0 : i32
    return %arg1, %arg2, %c0_i32 : i32, i32, i32
  }
  func.func @transform_2(%arg0: i32, %arg1: i32, %arg2: i32) -> (i32, i32) {
    %c0_i32 = arith.constant 0 : i32
    %c0_i32_0 = arith.constant 0 : i32
    return %arg0, %c0_i32 : i32, i32
  }
}

</mosaic_0001>

<bundles_post_ra>
// kernel: tpu_custom_call.1
= control target key start
LH: loop header
LB: loop body
LE: loop exit
PB: predicated region body
PF: predicated region fallthrough
CT: control target
= control target key end

     0   :  { %7 = vsyncpa [#allocation4], 0  ;;  %s936_s0 = inlined_call_operand.hbm [shape: f32[3,16,128], index: 0, kind: input, shape index: {}]   ;;  %s937_s1 = inlined_call_operand.hbm [shape: f32[3,128,128], index: 1, kind: input, shape index: {}]   ;;  %s938_s2 = inlined_call_operand.hbm [shape: f32[16,128], index: 2, kind: output, shape index: {}]  }
   0x1   :  { %9 = vsyncpa [#allocation4 + $0x1], 0 }
   0x2   :  { %10 = vsyncpa [#allocation7], 0 }
   0x3   :  { %12 = vsyncpa [#allocation7 + $0x1], 0 }
   0x4   :  { %13 = vsyncpa [#allocation5], 0  ;;  %s769_s9 = smov 0   ;;  %s771_s10 = smov 0  }
   0x5   :  { %s773_s11 = smov 0   ;;  %s775_s12 = smov 0  }
   0x6   :  { %s777_s13 = smov 0   ;;  %s779_s14 = smov 0  }
   0x7 LB: > { %s461_s15 = sadd.s32 4294967295, %s744_s14   ;;  %s34_s16 = sadd.s32 1, %s740_s13  ;;  %s744_s14 = sphi %s779_s14, %s19_s14   ;;  %s740_s13 = sphi %s777_s13, %s948_s13   ;;  %s736_s12 = sphi %s775_s12, %s947_s12   ;;  %s732_s11 = sphi %s773_s11, %s946_s11   ;;  %s728_s10 = sphi %s771_s10, %s945_s10   ;;  %s724_s9 = sphi %s769_s9, %s944_s9  }
   0x8   : > { %p36_p0 = scmp.ge.s32.totalorder %s34_s16, 3  ;;  %s49_s17 = sadd.s32 1, %s732_s11 }
   0x9   : > { %p56_p1 = scmp.ne.s32.totalorder %s732_s11, %s728_s10  ;;  %p57_p2 = scmp.eq.s32.totalorder %s744_s14, 0 }
   0xa   : > { %s950_s16 = smov (%p36_p0, %s34_s16), 0  ;;  %p62_p4 = scmp.ne.s32.totalorder %s728_s10, %s724_s9 }
   0xb   : > { %p805_p3 = por %p57_p2, %p56_p1  ;;  %s42_s19 = ssub.s32 %s740_s13, %s950_s16 }
   0xc   : > { %p63_p5 = scmp.eq.s32.totalorder %s461_s15, 0  ;;  %p47_p6 = scmp.eq.s32.totalorder %s42_s19, 0 }
   0xd   : > { %p549_p8 = scmp.lt.s32.totalorder %s744_s14, 3  ;;  %s823_s22 = sand.u32 1, %s732_s11  }
   0xe   : > { %p814_p7 = por %p63_p5, %p62_p4  ;;  %s478_s23 = sshll.u32 %s740_s13, 8 }
   0xf   : > { %s820_s21 = scalar_select %p47_p6, %s732_s11, %s49_s17  }
  0x10   : > { %s464_s24 = sshll.u32 %s823_s22, 4  ;;  %s153_s27 = scalar_lea.hbm %s936_s0, %s478_s23 }
  0x11   : > { %s144_s28 = scalar_lea.vmem [#allocation3], %s464_s24  ;;  %p832_p9 = pnand %p549_p8, %p805_p3 }
  0x12   : > { %s154_s29 = sshll.u32 %s144_s28, 4  ;;  %s141_s3 = scalar_lea.sflag [#allocation4], %s823_s22  ;;  %s155_s29 = int_to_ptr.vmem [resolvable:$true] %s154_s29 }
  0x13   : > { %p608_p10 = pneg %p832_p9  ;;  %s619_s4 = scalar_lea.vmem %s155_s29, 256 }
  0x14   : > { %p620_p11 = scmp.ne.s32.totalorder %s155_s29, %s619_s4  ;;  %s746_s5 = smov [#allocation3]  }
  0x15   : > { %s624_s6 = sshll.u32 %s746_s5, 4  ;;  %s625_s6 = int_to_ptr.vmem [resolvable:$false] %s624_s6 }
  0x16   : > { %p622_p12 = pnand %p620_p11, %p608_p10  ;;  %s626_s7 = scalar_lea.vmem %s625_s6, 512 }
  0x17   : > { %p627_p0 = scmp.lt.s32.totalorder %s155_s29, %s625_s6  ;;  %p628_p1 = scmp.lt.s32.totalorder %s626_s7, %s619_s4 }
  0x18   : > { %p623_p13 = pneg %p622_p12 }
  0x19   : > { %p629_p2 = por %p628_p1, %p627_p0 }
  0x1b   : > { %p630_p3 = pnand %p629_p2, %p623_p13 }
  0x1d   : > { %633 = shalt.err (!%p630_p3)
}
  0x1e   : > { %s747_s8 = smov 128   ;;  %s748_s9 = smov 8  }
  0x1f   : > { %545 = dma.hbm_to_vmem [thread:$0]  (!%p832_p9), %s153_s27, 256, %s155_s29, %s141_s3, %s747_s8, %s747_s8, %s748_s9  }
  0x20   : > { %p470_p4 = scmp.ge.s32.totalorder %s744_s14, 1  ;;  %p185_p5 = scmp.lt.s32.totalorder %s744_s14, 4 }
  0x21   : > { %s467_s17 = sshll.u32 %s823_s22, 7  ;;  %s479_s19 = sshll.u32 %s740_s13, 11 }
  0x22   : > { %p850_p6 = pnand %p470_p4, %p185_p5  ;;  %s168_s23 = scalar_lea.vmem [#allocation6], %s467_s17 }
  0x23   : > { %s177_s24 = sshll.u32 %s168_s23, 4  ;;  %s176_s28 = scalar_lea.hbm %s937_s1, %s479_s19  ;;  %s178_s24 = int_to_ptr.vmem [resolvable:$true] %s177_s24 }
  0x24   : > { %s165_s4 = scalar_lea.sflag [#allocation7], %s823_s22  ;;  %s647_s5 = scalar_lea.vmem %s178_s24, 2048 }
  0x25   : > { %p648_p8 = scmp.ne.s32.totalorder %s178_s24, %s647_s5  ;;  %s749_s27 = smov [#allocation6]  }
  0x26   : > { %s652_s29 = sshll.u32 %s749_s27, 4  ;;  %s653_s29 = int_to_ptr.vmem [resolvable:$false] %s652_s29 }
  0x27   : > { %p650_p11 = pnand %p648_p8, %p608_p10  ;;  %s654_s3 = scalar_lea.vmem %s653_s29, 4096 }
  0x28   : > { %p655_p13 = scmp.lt.s32.totalorder %s178_s24, %s653_s29  ;;  %p656_p0 = scmp.lt.s32.totalorder %s654_s3, %s647_s5 }
  0x29   : > { %p651_p12 = pneg %p650_p11 }
  0x2a   : > { %p657_p1 = por %p656_p0, %p655_p13 }
  0x2c   : > { %p658_p2 = pnand %p657_p1, %p651_p12 }
  0x2e   : > { %661 = shalt.err (!%p658_p2)
}
  0x2f   : > { %548 = dma.hbm_to_vmem [thread:$0]  (!%p832_p9), %s176_s28, 2048, %s178_s24, %s165_s4, %s747_s8, %s747_s8, %s748_s9  }
  0x30   : > { %189 = sbr.rel (%p850_p6) target bundleno = 304 (0x130), region = 28  ;;  %s191_s22 = sand.u32 (!%p850_p6), 1, %s728_s10  }
  0x31   : > { %s471_s6 = sshll.u32 (!%p850_p6), %s191_s22, 4  ;;  %s192_s7 = scalar_lea.sflag (!%p850_p6), [#allocation4], %s191_s22 }
  0x32   : > { %s870_s17 = scalar_lea.vmem (!%p850_p6), [#allocation3], %s471_s6 }
  0x35   : > { %711 = dma.done.wait (%p814_p7), %s192_s7, 256  }
  0x36   : > { %713 = vsyncadd (%p814_p7), %s192_s7, 4294967040  ;;  %s472_s30 = sshll.u32 %s191_s22, 7  ;;  %s201_s19 = scalar_lea.sflag [#allocation7], %s191_s22 }
  0x37   : > { %s876_s23 = scalar_lea.vmem [#allocation6], %s472_s30 }
  0x38   : > { %715 = dma.done.wait (%p814_p7), %s201_s19, 2048  }
  0x39   : > { %717 = vsyncadd (%p814_p7), %s201_s19, 4294965248  ;;  %p228_p9 = scmp.eq.s32.totalorder %s736_s12, 0 }
  0x3a   : > { %v750_v0 = vmov (%p228_p9), 0.0  }
  0x3b   : > { %233 = sbr.rel (!%p228_p9) target bundleno = 64 (0x40), region = 40  ;;  %234 = vst [vmem:[#allocation8] sm:$0xff] (%p228_p9), %v750_v0  ;;  %235 = vst [vmem:[#allocation8 + $0x8] sm:$0xff] (%p228_p9), %v750_v0 }
  0x40 PF: > { %v260_v1 = vld [vmem:[%s876_s23 + $0x78] sm:$0xff]  ;;  %v259_v2 = vld [vmem:[%s876_s23 + $0x70] sm:$0xff]  ;;  %v258_v3 = vld [vmem:[%s876_s23 + $0x68] sm:$0xff]  ;;  %s751_s12 = smov [#allocation8]   ;;  %p903_p7 = scmp.eq.s32.totalorder %s461_s15, 2 }
  0x41   : > { %499 = vmatprep.subr.mxu0 %v260_v1  ;;  %v257_v4 = vld [vmem:[%s876_s23 + $0x60] sm:$0xff]  ;;  %v256_v6 = vld [vmem:[%s876_s23 + $0x58] sm:$0xff]  ;;  %v255_v7 = vld [vmem:[%s876_s23 + $0x50] sm:$0xff]  ;;  %s364_s20 = sshll.u32 %s751_s12, 4  ;;  %s365_s20 = int_to_ptr.vmem [resolvable:$true] %s364_s20 }
  0x42   : > { %500 = vmatpush3.msra.mxu0 %v260_v1  ;;  %v243_v5 = vld [vmem:[%s870_s17] sm:$0xff]  ;;  %v254_v8 = vld [vmem:[%s876_s23 + $0x48] sm:$0xff]  ;;  %v252_v10 = vld [vmem:[%s876_s23 + $0x38] sm:$0xff]  ;;  %s662_s9 = scalar_lea.vmem %s365_s20, 256  ;;  %p669_p5 = scmp.lt.s32.totalorder %s365_s20, %s365_s20 }
  0x43   : > { %501 = vmatprep.subr.mxu0 %v259_v2  ;;  %531 = vmatprep.mubr.f32.mxu0 %v243_v5  ;;  %v253_v9 = vld [vmem:[%s876_s23 + $0x40] sm:$0xff]  ;;  %v251_v11 = vld [vmem:[%s876_s23 + $0x30] sm:$0xff]  ;;  %v250_v12 = vld [vmem:[%s876_s23 + $0x28] sm:$0xff]  ;;  %p663_p10 = scmp.ne.s32.totalorder %s365_s20, %s662_s9  ;;  %p670_p6 = scmp.lt.s32.totalorder %s662_s9, %s662_s9 }
  0x44   : > { %502 = vmatpush3.msra.mxu0 %v259_v2  ;;  %v249_v13 = vld [vmem:[%s876_s23 + $0x20] sm:$0xff]  ;;  %v248_v14 = vld [vmem:[%s876_s23 + $0x18] sm:$0xff]  ;;  %v247_v15 = vld [vmem:[%s876_s23 + $0x10] sm:$0xff] }
  0x45   : > { %503 = vmatprep.subr.mxu0 %v258_v3  ;;  %v246_v16 = vld [vmem:[%s876_s23 + $0x8] sm:$0xff]  ;;  %v245_v17 = vld [vmem:[%s876_s23] sm:$0xff]  ;;  %p664_p3 = pnand %p663_p10, %p903_p7  ;;  %p671_p8 = por %p670_p6, %p669_p5 }
  0x46   : > { %504 = vmatpush3.msra.mxu0 %v258_v3  ;;  %v244_v18 = vld [vmem:[%s870_s17 + $0x8] sm:$0xff]  ;;  %v343_v25 = vld [vmem:[#allocation8] sm:$0xff] }
  0x47   : > { %505 = vmatprep.subr.mxu0 %v257_v4  ;;  %v344_v21 = vld [vmem:[#allocation8 + $0x8] sm:$0xff]  ;;  %p665_p4 = pneg %p664_p3 }
  0x48   : > { %506 = vmatpush3.msra.mxu0 %v257_v4 }
  0x49   : > { %507 = vmatprep.subr.mxu0 %v256_v6  ;;  %p672_p11 = pnand %p671_p8, %p665_p4 }
  0x4a   : > { %508 = vmatpush3.msra.mxu0 %v256_v6 }
  0x4b   : > { %509 = vmatprep.subr.mxu0 %v255_v7 }
  0x4c   : > { %510 = vmatpush3.msra.mxu0 %v255_v7 }
  0x4d   : > { %511 = vmatprep.subr.mxu0 %v254_v8 }
  0x4e   : > { %512 = vmatpush3.msra.mxu0 %v254_v8 }
  0x4f   : > { %513 = vmatprep.subr.mxu0 %v253_v9 }
  0x50   : > { %514 = vmatpush3.msra.mxu0 %v253_v9 }
  0x51   : > { %515 = vmatprep.subr.mxu0 %v252_v10 }
  0x52   : > { %516 = vmatpush3.msra.mxu0 %v252_v10 }
  0x53   : > { %517 = vmatprep.subr.mxu0 %v251_v11 }
  0x54   : > { %518 = vmatpush3.msra.mxu0 %v251_v11 }
  0x55   : > { %519 = vmatprep.subr.mxu0 %v250_v12 }
  0x56   : > { %520 = vmatpush3.msra.mxu0 %v250_v12 }
  0x57   : > { %521 = vmatprep.subr.mxu0 %v249_v13 }
  0x58   : > { %522 = vmatpush3.msra.mxu0 %v249_v13 }
  0x59   : > { %523 = vmatprep.subr.mxu0 %v248_v14 }
  0x5a   : > { %524 = vmatpush3.msra.mxu0 %v248_v14 }
  0x5b   : > { %525 = vmatprep.subr.mxu0 %v247_v15 }
  0x5c   : > { %526 = vmatpush3.msra.mxu0 %v247_v15 }
  0x5d   : > { %527 = vmatprep.subr.mxu0 %v246_v16 }
  0x5e   : > { %528 = vmatpush3.msra.mxu0 %v246_v16 }
  0x5f   : > { %529 = vmatprep.subr.mxu0 %v245_v17 }
  0x60   : > { %530 = vmatpush3.msra.mxu0 %v245_v17 }
  0x61   : > { %532 = vmatmul.mubr.f32.vlgmr.msra.gmra.mxu0 %v244_v18 }
 0x121   : > { %v533_v19 = vpop.f32.mrf.mxu0 }
 0x122   : > { %v348_v20 = vmax.f32 %v533_v19, 0.0 }
 0x123   : > { %v327_v22 = vpop.f32.mrf.mxu0 }
 0x124   : > { %v350_v23 = vmul.f32 0.33333334, %v348_v20  ;;  %v347_v24 = vmax.f32 %v327_v22, 0.0 }
 0x126   : > { %v352_v26 = vadd.f32 %v350_v23, %v344_v21  ;;  %v349_v27 = vmul.f32 0.33333334, %v347_v24 }
 0x128   : > { %354 = vst [vmem:[#allocation8 + $0x8] sm:$0xff] %v352_v26  ;;  %v351_v28 = vadd.f32 %v349_v27, %v343_v25 }
 0x12a   : > { %353 = vst [vmem:[#allocation8] sm:$0xff] %v351_v28 }
 0x12b   : > { %675 = shalt.err (!%p672_p11)
}
 0x12c   : > { %s752_s18 = smov 128   ;;  %s753_s15 = smov 8  }
 0x12d   : > { %539 = dma.vmem_to_hbm [thread:$0]  (%p903_p7), %s365_s20, 256, %s938_s2, [#allocation5], %s752_s18, %s752_s18, %s753_s15  }
 0x12e   : > { %719 = dma.done.wait (%p903_p7), [#allocation5], 256  }
 0x12f   : > { %721 = vsyncadd (%p903_p7), [#allocation5], 4294967040 }
 0x130 PF: > { %s19_s14 = sadd.s32 1, %s744_s14   ;;  %s944_s9 = smov %s728_s10 }
 0x131   : > { %p16_p12 = scmp.ge.s32.totalorder %s19_s14, 5   ;;  %s945_s10 = smov %s732_s11 }
 0x132   : > { %s946_s11 = smov %s820_s21  ;;  %s947_s12 = smov %s740_s13 }
 0x133   : > { %s948_s13 = smov %s950_s16  ;;  %18 = sbr.rel (!%p16_p12) target bundleno = 7 (0x7), region = 91 }
 0x138   :  { %380 = vsyncpa [#allocation4], 1 }
 0x139   :  { %382 = vsyncpa [#allocation4 + $0x1], 1 }
 0x13a   :  { %383 = vsyncpa [#allocation7], 1 }
 0x13b   :  { %385 = vsyncpa [#allocation7 + $0x1], 1 }
 0x13c   :  { %386 = vsyncpa [#allocation5], 1 }
 0x13d   :  { %388 = vsyncpa [#allocation5 + $0x1], 1 }

</bundles_post_ra>
